<compile_context>
chip_gen: v6e
topology: v6e:2x2x1
jax: 0.10.0
libtpu: 0.0.40
codegen_flags: <defaults>
</compile_context>

<pallas_src>
import functools

import jax
import jax.numpy as jnp
from jax.experimental import pallas as pl
from jax.experimental.pallas import tpu as pltpu


def _round_up(n, m):
    return ((n + m - 1) // m) * m


# --------------------------------------------------------------------------
# Kernel
# --------------------------------------------------------------------------
def _encoder_kernel(n_layers, compute_dtype, *refs):
    """Fused encoder forward for one batch tile.

    refs layout:
      x_ref, w_in, b_in, [w_h0, b_h0, ...], w_head, b_head, out_ref
    Weights are (in, out) row-major in `compute_dtype`; biases are (1, out)
    f32. Eval-mode BatchNorm has been folded into the *next* linear layer by
    the wrapper; the mu/sigma heads are fused into one lane-dense head matmul.
    """
    x_ref = refs[0]
    w_in, b_in = refs[1], refs[2]
    idx = 3
    hidden = []
    for _ in range(n_layers):
        hidden.append((refs[idx], refs[idx + 1]))
        idx += 2
    w_head, b_head = refs[idx], refs[idx + 1]
    out_ref = refs[idx + 2]

    # input_block: Linear -> ReLU  (Dropout = identity in eval; BN folded fwd)
    h = jnp.dot(x_ref[...].astype(compute_dtype), w_in[...],
                preferred_element_type=jnp.float32) + b_in[...]
    h = jnp.maximum(h, 0.0)

    # hidden blocks (previous block's BN already folded into w/b)
    for (w, b) in hidden:
        h = jnp.dot(h.astype(compute_dtype), w[...],
                    preferred_element_type=jnp.float32) + b[...]
        h = jnp.maximum(h, 0.0)

    # fused mu|sigma head (last BN folded in), one lane-dense store
    out = jnp.dot(h.astype(compute_dtype), w_head[...],
                  preferred_element_type=jnp.float32) + b_head[...]
    out_ref[...] = out.astype(out_ref.dtype)


# --------------------------------------------------------------------------
# Wrapper helpers
# --------------------------------------------------------------------------
def _fold_bn_into_next_linear(w_next, b_next, scale, shift):
    """W @ (scale*r + shift) + b  ==  (W*scale) @ r + (W @ shift + b).

    w_next is PyTorch-convention (out, in); scale/shift act on its 'in' axis.
    """
    w = w_next * scale[None, :]
    b = b_next + w_next @ shift
    return w, b


def _vmem_capacity_bytes():
    """Per-TensorCore VMEM capacity; conservative (v7x) fallback on failure."""
    try:
        return int(pltpu.get_tpu_info().vmem_capacity_bytes)
    except Exception:
        return 64 * 1024 * 1024


def _choose_batch_tile(B, in_dim, hid_pad, head_pad, n_layers,
                       w_itemsize, x_itemsize, out_itemsize,
                       budget_bytes, weight_buffers, split_two):
    """Batch tile that keeps single-buffered resident weights plus
    double-buffered x/out tiles inside the generation's VMEM budget."""
    w_bytes = (in_dim * hid_pad
               + n_layers * hid_pad * hid_pad
               + hid_pad * head_pad) * w_itemsize
    b_bytes = ((1 + n_layers) * hid_pad + head_pad) * 4
    resident = weight_buffers * (w_bytes + b_bytes)
    # per batch row: double-buffered x tile (input dtype) + double-buffered
    # out tile (out dtype) + live activations (f32 accum + compute-dtype feed)
    per_row = (2 * in_dim * x_itemsize
               + 2 * head_pad * out_itemsize
               + hid_pad * (4 + w_itemsize))
    avail = budget_bytes - resident
    if avail < 8 * per_row:
        return None  # resident weights blow the budget -> caller handles
    tb = avail // per_row
    tb = min(tb, 1024)
    tb = min(tb, _round_up(B, 8))
    if split_two and B > 8:
        # guarantee >= 2 grid steps so both v7x TensorCores get work
        tb = min(tb, _round_up((B + 1) // 2, 8))
    if tb >= 256:
        tb = (tb // 256) * 256   # keep the 256-wide MXU (v6e/v7x) full
    else:
        tb = (tb // 8) * 8
    return int(max(8, tb))


# --------------------------------------------------------------------------
# Wrapper
# --------------------------------------------------------------------------
def encoder_forward(x, params, n_layers,
                    compute_dtype=jnp.bfloat16, out_dtype=jnp.float32):
    """Eval-mode encoder forward. Returns (mu, sigma), each [B, latent_dim]."""
    B, input_dim = x.shape
    hidden_dim = params["w_in"].shape[0]
    latent_dim = params["w_mu"].shape[0]
    head_dim = 2 * latent_dim

    # ---- fold eval-mode BN of every block into the NEXT linear layer -------
    w_in, b_in = params["w_in"], params["b_in"]
    scale, shift = params["bn_in_scale"], params["bn_in_shift"]
    hidden_wb = []
    for i in range(n_layers):
        w, b = _fold_bn_into_next_linear(
            params[f"w_h{i}"], params[f"b_h{i}"], scale, shift)
        hidden_wb.append((w, b))
        scale, shift = params[f"bn_h{i}_scale"], params[f"bn_h{i}_shift"]
    # fuse the two heads into one (2*latent, hidden) linear, then fold last BN
    w_head = jnp.concatenate([params["w_mu"], params["w_sigma"]], axis=0)
    b_head = jnp.concatenate([params["b_mu"], params["b_sigma"]], axis=0)
    w_head, b_head = _fold_bn_into_next_linear(w_head, b_head, scale, shift)

    # ---- feature padding (weights only; x feature axis stays untouched) ----
    hid_pad = _round_up(hidden_dim, 128)
    head_pad = _round_up(head_dim, 128)

    # ---- generation-aware VMEM budget / tile choice -------------------------
    cap = _vmem_capacity_bytes()
    if cap >= 96 * 1024 * 1024:            # v5e / v6e: 128 MiB VMEM
        budget, vmem_limit = 96 * 1024 * 1024, 110 * 1024 * 1024
        split_two = False                  # single TC -> biggest tile wins
    else:                                  # v7x: 64 MiB per TC, 2 TCs/chip
        budget, vmem_limit = 40 * 1024 * 1024, 48 * 1024 * 1024
        split_two = True

    w_itemsize = jnp.dtype(compute_dtype).itemsize
    TB = _choose_batch_tile(B, input_dim, hid_pad, head_pad, n_layers,
                            w_itemsize, jnp.dtype(x.dtype).itemsize,
                            jnp.dtype(out_dtype).itemsize,
                            budget, weight_buffers=1, split_two=split_two)
    if TB is None:
        # TODO(synk): weight-streaming fallback (tile hidden/head feature axes
        # with an inner pltpu.emit_pipeline) for hidden_dim too large to keep
        # every layer's weights VMEM-resident.
        raise ValueError(
            "encoder_forward: resident weights exceed the VMEM budget "
            f"({budget} bytes); reduce hidden_dim/n_layers or use bf16 "
            "weights, or add a weight-streaming path.")

    def prep_w(w, rows, cols):  # (out, in) torch -> padded (in, out)
        wt = w.T
        wt = jnp.pad(wt, ((0, rows - wt.shape[0]), (0, cols - wt.shape[1])))
        return wt.astype(compute_dtype)

    def prep_b(b, cols):
        return jnp.pad(b, (0, cols - b.shape[0])).reshape(1, cols).astype(jnp.float32)

    # x streams in its original dtype (cast in-kernel); batch padded only when
    # B is not already a multiple of the tile.
    if B % TB == 0:
        B_pad, x_in = B, x
    else:
        B_pad = _round_up(B, TB)
        x_in = jnp.pad(x, ((0, B_pad - B), (0, 0)))

    operands = [x_in, prep_w(w_in, input_dim, hid_pad), prep_b(b_in, hid_pad)]
    for (w, b) in hidden_wb:
        operands += [prep_w(w, hid_pad, hid_pad), prep_b(b, hid_pad)]
    operands += [prep_w(w_head, hid_pad, head_pad), prep_b(b_head, head_pad)]

    # ---- BlockSpecs: x/out tiled over the batch grid, weights resident -----
    def _build(single_buffer_weights):
        if single_buffer_weights:
            def w_spec(shape):
                return pl.BlockSpec(shape, lambda i: (0, 0),
                                    pipeline_mode=pl.Buffered(1))
        else:
            def w_spec(shape):
                return pl.BlockSpec(shape, lambda i: (0, 0))
        in_specs = [pl.BlockSpec((TB, input_dim), lambda i: (i, 0))]
        in_specs += [w_spec(op.shape) for op in operands[1:]]
        out_spec = pl.BlockSpec((TB, head_pad), lambda i: (i, 0))
        return pl.pallas_call(
            functools.partial(_encoder_kernel, n_layers, compute_dtype),
            out_shape=jax.ShapeDtypeStruct((B_pad, head_pad), out_dtype),
            grid=(B_pad // TB,),
            in_specs=in_specs,
            out_specs=out_spec,
            compiler_params=pltpu.CompilerParams(
                dimension_semantics=("parallel",),  # shard batch across TCs
                vmem_limit_bytes=vmem_limit,
            ),
        )

    try:
        out = _build(True)(*operands)
    except Exception:
        # Some JAX versions reject pipeline_mode on the top-level TPU
        # pipeline; fall back to default (double-buffered) weight specs.
        out = _build(False)(*operands)

    mu = out[:B, :latent_dim]
    sigma = out[:B, latent_dim:head_dim]
    return mu, sigma


# --------------------------------------------------------------------------
# Plain-JAX reference (unfolded, unfused) for correctness checking
# --------------------------------------------------------------------------
def _reference_forward(x, params, n_layers):
    def block(h, w, b, s, t):
        h = h @ w.T + b
        h = jnp.maximum(h, 0.0)
        return h * s + t

    h = block(x, params["w_in"], params["b_in"],
              params["bn_in_scale"], params["bn_in_shift"])
    for i in range(n_layers):
        h = block(h, params[f"w_h{i}"], params[f"b_h{i}"],
                  params[f"bn_h{i}_scale"], params[f"bn_h{i}_shift"])
    mu = h @ params["w_mu"].T + params["b_mu"]
    sigma = h @ params["w_sigma"].T + params["b_sigma"]
    return mu, sigma


def init_params(key, input_dim, hidden_dim, latent_dim, n_layers, bn_eps=1e-5):
    """nn.Linear-style init; BatchNorm with non-trivial running stats
    (stored pre-folded as per-feature scale/shift)."""
    params = {}

    def linear(k, out_f, in_f):
        k1, k2 = jax.random.split(k)
        bound = 1.0 / jnp.sqrt(in_f)
        w = jax.random.uniform(k1, (out_f, in_f), jnp.float32, -bound, bound)
        b = jax.random.uniform(k2, (out_f,), jnp.float32, -bound, bound)
        return w, b

    def batchnorm(k, n):
        kg, kb, km, kv = jax.random.split(k, 4)
        gamma = jax.random.uniform(kg, (n,), jnp.float32, 0.5, 1.5)
        beta = 0.1 * jax.random.normal(kb, (n,), jnp.float32)
        mean = 0.1 * jax.random.normal(km, (n,), jnp.float32)
        var = jax.random.uniform(kv, (n,), jnp.float32, 0.5, 1.5)
        s = gamma / jnp.sqrt(var + bn_eps)
        t = beta - s * mean
        return s, t

    n_keys = 2 * (1 + n_layers) + 2
    keys = jax.random.split(key, n_keys)
    ki = iter(range(n_keys))
    params["w_in"], params["b_in"] = linear(keys[next(ki)], hidden_dim, input_dim)
    params["bn_in_scale"], params["bn_in_shift"] = batchnorm(keys[next(ki)], hidden_dim)
    for i in range(n_layers):
        params[f"w_h{i}"], params[f"b_h{i}"] = linear(keys[next(ki)], hidden_dim, hidden_dim)
        params[f"bn_h{i}_scale"], params[f"bn_h{i}_shift"] = batchnorm(keys[next(ki)], hidden_dim)
    params["w_mu"], params["b_mu"] = linear(keys[next(ki)], latent_dim, hidden_dim)
    params["w_sigma"], params["b_sigma"] = linear(keys[next(ki)], latent_dim, hidden_dim)
    return params


if __name__ == "__main__":
    B, INPUT_DIM, HIDDEN_DIM, LATENT_DIM, N_LAYERS = 8, 16, 32, 8, 2

    key = jax.random.PRNGKey(0)
    kx, kp = jax.random.split(key)
    x = jax.random.normal(kx, (B, INPUT_DIM), dtype=jnp.float32)
    params = init_params(kp, INPUT_DIM, HIDDEN_DIM, LATENT_DIM, N_LAYERS)

    mu_ref, sigma_ref = _reference_forward(x, params, N_LAYERS)

    # exact f32 MXU path (tight tolerance)
    mu, sigma = encoder_forward(x, params, N_LAYERS, compute_dtype=jnp.float32)
    jax.block_until_ready((mu, sigma))
    assert mu.shape == (B, LATENT_DIM) and sigma.shape == (B, LATENT_DIM)
    assert jnp.allclose(mu, mu_ref, atol=1e-4, rtol=1e-4)
    assert jnp.allclose(sigma, sigma_ref, atol=1e-4, rtol=1e-4)

    # default bf16-fed MXU path (f32 accumulation), looser tolerance
    mu16, sigma16 = encoder_forward(x, params, N_LAYERS)
    jax.block_until_ready((mu16, sigma16))
    assert mu16.shape == (B, LATENT_DIM) and sigma16.shape == (B, LATENT_DIM)
    assert jnp.allclose(mu16, mu_ref, atol=5e-2, rtol=5e-2)
    assert jnp.allclose(sigma16, sigma_ref, atol=5e-2, rtol=5e-2)

    print("KERNEL_OK")
</pallas_src>

<mosaic_0001>
module attributes {stable_mosaic.version = 11 : i64} {
  func.func @_encoder_kernel(%arg0: i32, %arg1: memref<8x16xf32, #tpu.memory_space<vmem>>, %arg2: memref<16x128xf32, #tpu.memory_space<vmem>>, %arg3: memref<1x128xf32, #tpu.memory_space<vmem>>, %arg4: memref<128x128xf32, #tpu.memory_space<vmem>>, %arg5: memref<1x128xf32, #tpu.memory_space<vmem>>, %arg6: memref<128x128xf32, #tpu.memory_space<vmem>>, %arg7: memref<1x128xf32, #tpu.memory_space<vmem>>, %arg8: memref<128x128xf32, #tpu.memory_space<vmem>>, %arg9: memref<1x128xf32, #tpu.memory_space<vmem>>, %arg10: memref<8x128xf32, #tpu.memory_space<vmem>>) attributes {dimension_semantics = [#tpu.dimension_semantics<parallel>], iteration_bounds = array<i64: 1>, scalar_prefetch = 0 : i64, scratch_operands = 0 : i64, tpu.core_type = #tpu.core_type<tc>, window_params = [{transform_indices = @transform_0, window_bounds = array<i64: 8, 16>}, {pipeline_mode = #tpu.pipeline_mode<synchronous>, transform_indices = @transform_1, window_bounds = array<i64: 16, 128>}, {pipeline_mode = #tpu.pipeline_mode<synchronous>, transform_indices = @transform_2, window_bounds = array<i64: 1, 128>}, {pipeline_mode = #tpu.pipeline_mode<synchronous>, transform_indices = @transform_3, window_bounds = array<i64: 128, 128>}, {pipeline_mode = #tpu.pipeline_mode<synchronous>, transform_indices = @transform_4, window_bounds = array<i64: 1, 128>}, {pipeline_mode = #tpu.pipeline_mode<synchronous>, transform_indices = @transform_5, window_bounds = array<i64: 128, 128>}, {pipeline_mode = #tpu.pipeline_mode<synchronous>, transform_indices = @transform_6, window_bounds = array<i64: 1, 128>}, {pipeline_mode = #tpu.pipeline_mode<synchronous>, transform_indices = @transform_7, window_bounds = array<i64: 128, 128>}, {pipeline_mode = #tpu.pipeline_mode<synchronous>, transform_indices = @transform_8, window_bounds = array<i64: 1, 128>}, {transform_indices = @transform_9, window_bounds = array<i64: 8, 128>}]} {
    %c0 = arith.constant 0 : index
    %c0_0 = arith.constant 0 : index
    %0 = vector.load %arg1[%c0, %c0_0] : memref<8x16xf32, #tpu.memory_space<vmem>>, vector<8x16xf32>
    %c0_1 = arith.constant 0 : index
    %c0_2 = arith.constant 0 : index
    %1 = vector.load %arg2[%c0_1, %c0_2] : memref<16x128xf32, #tpu.memory_space<vmem>>, vector<16x128xf32>
    %cst = arith.constant dense<0.000000e+00> : vector<8x128xf32>
    %2 = tpu.matmul %0, %1, %cst {dimension_numbers = #tpu.dot_dimension_numbers<[1], [0], [0], [1], [0, 0, 1, 1], [], []>} : vector<8x16xf32>, vector<16x128xf32>, vector<8x128xf32> -> vector<8x128xf32>
    %c0_3 = arith.constant 0 : index
    %c0_4 = arith.constant 0 : index
    %3 = vector.load %arg3[%c0_3, %c0_4] : memref<1x128xf32, #tpu.memory_space<vmem>>, vector<1x128xf32>
    %4 = vector.broadcast %3 : vector<1x128xf32> to vector<8x128xf32>
    %5 = arith.addf %2, %4 : vector<8x128xf32>
    %cst_5 = arith.constant 0.000000e+00 : f32
    %6 = vector.broadcast %cst_5 : f32 to vector<8x128xf32>
    %7 = arith.maximumf %5, %6 : vector<8x128xf32>
    %c0_6 = arith.constant 0 : index
    %c0_7 = arith.constant 0 : index
    %8 = vector.load %arg4[%c0_6, %c0_7] : memref<128x128xf32, #tpu.memory_space<vmem>>, vector<128x128xf32>
    %cst_8 = arith.constant dense<0.000000e+00> : vector<8x128xf32>
    %9 = tpu.matmul %7, %8, %cst_8 {dimension_numbers = #tpu.dot_dimension_numbers<[1], [0], [0], [1], [0, 0, 1, 1], [], []>} : vector<8x128xf32>, vector<128x128xf32>, vector<8x128xf32> -> vector<8x128xf32>
    %c0_9 = arith.constant 0 : index
    %c0_10 = arith.constant 0 : index
    %10 = vector.load %arg5[%c0_9, %c0_10] : memref<1x128xf32, #tpu.memory_space<vmem>>, vector<1x128xf32>
    %11 = vector.broadcast %10 : vector<1x128xf32> to vector<8x128xf32>
    %12 = arith.addf %9, %11 : vector<8x128xf32>
    %cst_11 = arith.constant 0.000000e+00 : f32
    %13 = vector.broadcast %cst_11 : f32 to vector<8x128xf32>
    %14 = arith.maximumf %12, %13 : vector<8x128xf32>
    %c0_12 = arith.constant 0 : index
    %c0_13 = arith.constant 0 : index
    %15 = vector.load %arg6[%c0_12, %c0_13] : memref<128x128xf32, #tpu.memory_space<vmem>>, vector<128x128xf32>
    %cst_14 = arith.constant dense<0.000000e+00> : vector<8x128xf32>
    %16 = tpu.matmul %14, %15, %cst_14 {dimension_numbers = #tpu.dot_dimension_numbers<[1], [0], [0], [1], [0, 0, 1, 1], [], []>} : vector<8x128xf32>, vector<128x128xf32>, vector<8x128xf32> -> vector<8x128xf32>
    %c0_15 = arith.constant 0 : index
    %c0_16 = arith.constant 0 : index
    %17 = vector.load %arg7[%c0_15, %c0_16] : memref<1x128xf32, #tpu.memory_space<vmem>>, vector<1x128xf32>
    %18 = vector.broadcast %17 : vector<1x128xf32> to vector<8x128xf32>
    %19 = arith.addf %16, %18 : vector<8x128xf32>
    %cst_17 = arith.constant 0.000000e+00 : f32
    %20 = vector.broadcast %cst_17 : f32 to vector<8x128xf32>
    %21 = arith.maximumf %19, %20 : vector<8x128xf32>
    %c0_18 = arith.constant 0 : index
    %c0_19 = arith.constant 0 : index
    %22 = vector.load %arg8[%c0_18, %c0_19] : memref<128x128xf32, #tpu.memory_space<vmem>>, vector<128x128xf32>
    %cst_20 = arith.constant dense<0.000000e+00> : vector<8x128xf32>
    %23 = tpu.matmul %21, %22, %cst_20 {dimension_numbers = #tpu.dot_dimension_numbers<[1], [0], [0], [1], [0, 0, 1, 1], [], []>} : vector<8x128xf32>, vector<128x128xf32>, vector<8x128xf32> -> vector<8x128xf32>
    %c0_21 = arith.constant 0 : index
    %c0_22 = arith.constant 0 : index
    %24 = vector.load %arg9[%c0_21, %c0_22] : memref<1x128xf32, #tpu.memory_space<vmem>>, vector<1x128xf32>
    %25 = vector.broadcast %24 : vector<1x128xf32> to vector<8x128xf32>
    %26 = arith.addf %23, %25 : vector<8x128xf32>
    %c0_23 = arith.constant 0 : index
    %c0_24 = arith.constant 0 : index
    %27 = vector.load %arg10[%c0_23, %c0_24] : memref<8x128xf32, #tpu.memory_space<vmem>>, vector<8x128xf32>
    tpu.vector_store %arg10[%c0_23, %c0_24], %26 {strides = array<i32>} : memref<8x128xf32, #tpu.memory_space<vmem>>, vector<8x128xf32>,
    return
  }
  func.func @transform_0(%arg0: i32) -> (i32, i32) {
    %c0_i32 = arith.constant 0 : i32
    %c0_i32_0 = arith.constant 0 : i32
    return %arg0, %c0_i32 : i32, i32
  }
  func.func @transform_1(%arg0: i32) -> (i32, i32) {
    %c0_i32 = arith.constant 0 : i32
    %c0_i32_0 = arith.constant 0 : i32
    %c0_i32_1 = arith.constant 0 : i32
    return %c0_i32, %c0_i32_0 : i32, i32
  }
  func.func @transform_2(%arg0: i32) -> (i32, i32) {
    %c0_i32 = arith.constant 0 : i32
    %c0_i32_0 = arith.constant 0 : i32
    %c0_i32_1 = arith.constant 0 : i32
    return %c0_i32, %c0_i32_0 : i32, i32
  }
  func.func @transform_3(%arg0: i32) -> (i32, i32) {
    %c0_i32 = arith.constant 0 : i32
    %c0_i32_0 = arith.constant 0 : i32
    %c0_i32_1 = arith.constant 0 : i32
    return %c0_i32, %c0_i32_0 : i32, i32
  }
  func.func @transform_4(%arg0: i32) -> (i32, i32) {
    %c0_i32 = arith.constant 0 : i32
    %c0_i32_0 = arith.constant 0 : i32
    %c0_i32_1 = arith.constant 0 : i32
    return %c0_i32, %c0_i32_0 : i32, i32
  }
  func.func @transform_5(%arg0: i32) -> (i32, i32) {
    %c0_i32 = arith.constant 0 : i32
    %c0_i32_0 = arith.constant 0 : i32
    %c0_i32_1 = arith.constant 0 : i32
    return %c0_i32, %c0_i32_0 : i32, i32
  }
  func.func @transform_6(%arg0: i32) -> (i32, i32) {
    %c0_i32 = arith.constant 0 : i32
    %c0_i32_0 = arith.constant 0 : i32
    %c0_i32_1 = arith.constant 0 : i32
    return %c0_i32, %c0_i32_0 : i32, i32
  }
  func.func @transform_7(%arg0: i32) -> (i32, i32) {
    %c0_i32 = arith.constant 0 : i32
    %c0_i32_0 = arith.constant 0 : i32
    %c0_i32_1 = arith.constant 0 : i32
    return %c0_i32, %c0_i32_0 : i32, i32
  }
  func.func @transform_8(%arg0: i32) -> (i32, i32) {
    %c0_i32 = arith.constant 0 : i32
    %c0_i32_0 = arith.constant 0 : i32
    %c0_i32_1 = arith.constant 0 : i32
    return %c0_i32, %c0_i32_0 : i32, i32
  }
  func.func @transform_9(%arg0: i32) -> (i32, i32) {
    %c0_i32 = arith.constant 0 : i32
    %c0_i32_0 = arith.constant 0 : i32
    return %arg0, %c0_i32 : i32, i32
  }
}

module attributes {stable_mosaic.version = 11 : i64} {
  func.func @_encoder_kernel(%arg0: i32, %arg1: memref<8x16xf32, #tpu.memory_space<vmem>>, %arg2: memref<16x128xf32, #tpu.memory_space<vmem>>, %arg3: memref<1x128xf32, #tpu.memory_space<vmem>>, %arg4: memref<128x128xf32, #tpu.memory_space<vmem>>, %arg5: memref<1x128xf32, #tpu.memory_space<vmem>>, %arg6: memref<128x128xf32, #tpu.memory_space<vmem>>, %arg7: memref<1x128xf32, #tpu.memory_space<vmem>>, %arg8: memref<128x128xf32, #tpu.memory_space<vmem>>, %arg9: memref<1x128xf32, #tpu.memory_space<vmem>>, %arg10: memref<8x128xf32, #tpu.memory_space<vmem>>) attributes {dimension_semantics = [#tpu.dimension_semantics<parallel>], iteration_bounds = array<i64: 1>, scalar_prefetch = 0 : i64, scratch_operands = 0 : i64, tpu.core_type = #tpu.core_type<tc>, window_params = [{transform_indices = @transform_0, window_bounds = array<i64: 8, 16>}, {pipeline_mode = #tpu.pipeline_mode<synchronous>, transform_indices = @transform_1, window_bounds = array<i64: 16, 128>}, {pipeline_mode = #tpu.pipeline_mode<synchronous>, transform_indices = @transform_2, window_bounds = array<i64: 1, 128>}, {pipeline_mode = #tpu.pipeline_mode<synchronous>, transform_indices = @transform_3, window_bounds = array<i64: 128, 128>}, {pipeline_mode = #tpu.pipeline_mode<synchronous>, transform_indices = @transform_4, window_bounds = array<i64: 1, 128>}, {pipeline_mode = #tpu.pipeline_mode<synchronous>, transform_indices = @transform_5, window_bounds = array<i64: 128, 128>}, {pipeline_mode = #tpu.pipeline_mode<synchronous>, transform_indices = @transform_6, window_bounds = array<i64: 1, 128>}, {pipeline_mode = #tpu.pipeline_mode<synchronous>, transform_indices = @transform_7, window_bounds = array<i64: 128, 128>}, {pipeline_mode = #tpu.pipeline_mode<synchronous>, transform_indices = @transform_8, window_bounds = array<i64: 1, 128>}, {transform_indices = @transform_9, window_bounds = array<i64: 8, 128>}]} {
    %c0 = arith.constant 0 : index
    %c0_0 = arith.constant 0 : index
    %0 = vector.load %arg1[%c0, %c0_0] : memref<8x16xf32, #tpu.memory_space<vmem>>, vector<8x16xf32>
    %c0_1 = arith.constant 0 : index
    %c0_2 = arith.constant 0 : index
    %1 = vector.load %arg2[%c0_1, %c0_2] : memref<16x128xf32, #tpu.memory_space<vmem>>, vector<16x128xf32>
    %cst = arith.constant dense<0.000000e+00> : vector<8x128xf32>
    %2 = tpu.matmul %0, %1, %cst {dimension_numbers = #tpu.dot_dimension_numbers<[1], [0], [0], [1], [0, 0, 1, 1], [], []>} : vector<8x16xf32>, vector<16x128xf32>, vector<8x128xf32> -> vector<8x128xf32>
    %c0_3 = arith.constant 0 : index
    %c0_4 = arith.constant 0 : index
    %3 = vector.load %arg3[%c0_3, %c0_4] : memref<1x128xf32, #tpu.memory_space<vmem>>, vector<1x128xf32>
    %4 = vector.broadcast %3 : vector<1x128xf32> to vector<8x128xf32>
    %5 = arith.addf %2, %4 : vector<8x128xf32>
    %cst_5 = arith.constant 0.000000e+00 : f32
    %6 = vector.broadcast %cst_5 : f32 to vector<8x128xf32>
    %7 = arith.maximumf %5, %6 : vector<8x128xf32>
    %c0_6 = arith.constant 0 : index
    %c0_7 = arith.constant 0 : index
    %8 = vector.load %arg4[%c0_6, %c0_7] : memref<128x128xf32, #tpu.memory_space<vmem>>, vector<128x128xf32>
    %cst_8 = arith.constant dense<0.000000e+00> : vector<8x128xf32>
    %9 = tpu.matmul %7, %8, %cst_8 {dimension_numbers = #tpu.dot_dimension_numbers<[1], [0], [0], [1], [0, 0, 1, 1], [], []>} : vector<8x128xf32>, vector<128x128xf32>, vector<8x128xf32> -> vector<8x128xf32>
    %c0_9 = arith.constant 0 : index
    %c0_10 = arith.constant 0 : index
    %10 = vector.load %arg5[%c0_9, %c0_10] : memref<1x128xf32, #tpu.memory_space<vmem>>, vector<1x128xf32>
    %11 = vector.broadcast %10 : vector<1x128xf32> to vector<8x128xf32>
    %12 = arith.addf %9, %11 : vector<8x128xf32>
    %cst_11 = arith.constant 0.000000e+00 : f32
    %13 = vector.broadcast %cst_11 : f32 to vector<8x128xf32>
    %14 = arith.maximumf %12, %13 : vector<8x128xf32>
    %c0_12 = arith.constant 0 : index
    %c0_13 = arith.constant 0 : index
    %15 = vector.load %arg6[%c0_12, %c0_13] : memref<128x128xf32, #tpu.memory_space<vmem>>, vector<128x128xf32>
    %cst_14 = arith.constant dense<0.000000e+00> : vector<8x128xf32>
    %16 = tpu.matmul %14, %15, %cst_14 {dimension_numbers = #tpu.dot_dimension_numbers<[1], [0], [0], [1], [0, 0, 1, 1], [], []>} : vector<8x128xf32>, vector<128x128xf32>, vector<8x128xf32> -> vector<8x128xf32>
    %c0_15 = arith.constant 0 : index
    %c0_16 = arith.constant 0 : index
    %17 = vector.load %arg7[%c0_15, %c0_16] : memref<1x128xf32, #tpu.memory_space<vmem>>, vector<1x128xf32>
    %18 = vector.broadcast %17 : vector<1x128xf32> to vector<8x128xf32>
    %19 = arith.addf %16, %18 : vector<8x128xf32>
    %cst_17 = arith.constant 0.000000e+00 : f32
    %20 = vector.broadcast %cst_17 : f32 to vector<8x128xf32>
    %21 = arith.maximumf %19, %20 : vector<8x128xf32>
    %c0_18 = arith.constant 0 : index
    %c0_19 = arith.constant 0 : index
    %22 = vector.load %arg8[%c0_18, %c0_19] : memref<128x128xf32, #tpu.memory_space<vmem>>, vector<128x128xf32>
    %cst_20 = arith.constant dense<0.000000e+00> : vector<8x128xf32>
    %23 = tpu.matmul %21, %22, %cst_20 {dimension_numbers = #tpu.dot_dimension_numbers<[1], [0], [0], [1], [0, 0, 1, 1], [], []>} : vector<8x128xf32>, vector<128x128xf32>, vector<8x128xf32> -> vector<8x128xf32>
    %c0_21 = arith.constant 0 : index
    %c0_22 = arith.constant 0 : index
    %24 = vector.load %arg9[%c0_21, %c0_22] : memref<1x128xf32, #tpu.memory_space<vmem>>, vector<1x128xf32>
    %25 = vector.broadcast %24 : vector<1x128xf32> to vector<8x128xf32>
    %26 = arith.addf %23, %25 : vector<8x128xf32>
    %c0_23 = arith.constant 0 : index
    %c0_24 = arith.constant 0 : index
    %27 = vector.load %arg10[%c0_23, %c0_24] : memref<8x128xf32, #tpu.memory_space<vmem>>, vector<8x128xf32>
    tpu.vector_store %arg10[%c0_23, %c0_24], %26 {strides = array<i32>} : memref<8x128xf32, #tpu.memory_space<vmem>>, vector<8x128xf32>,
    return
  }
  func.func @transform_0(%arg0: i32) -> (i32, i32) {
    %c0_i32 = arith.constant 0 : i32
    %c0_i32_0 = arith.constant 0 : i32
    return %arg0, %c0_i32 : i32, i32
  }
  func.func @transform_1(%arg0: i32) -> (i32, i32) {
    %c0_i32 = arith.constant 0 : i32
    %c0_i32_0 = arith.constant 0 : i32
    %c0_i32_1 = arith.constant 0 : i32
    return %c0_i32, %c0_i32_0 : i32, i32
  }
  func.func @transform_2(%arg0: i32) -> (i32, i32) {
    %c0_i32 = arith.constant 0 : i32
    %c0_i32_0 = arith.constant 0 : i32
    %c0_i32_1 = arith.constant 0 : i32
    return %c0_i32, %c0_i32_0 : i32, i32
  }
  func.func @transform_3(%arg0: i32) -> (i32, i32) {
    %c0_i32 = arith.constant 0 : i32
    %c0_i32_0 = arith.constant 0 : i32
    %c0_i32_1 = arith.constant 0 : i32
    return %c0_i32, %c0_i32_0 : i32, i32
  }
  func.func @transform_4(%arg0: i32) -> (i32, i32) {
    %c0_i32 = arith.constant 0 : i32
    %c0_i32_0 = arith.constant 0 : i32
    %c0_i32_1 = arith.constant 0 : i32
    return %c0_i32, %c0_i32_0 : i32, i32
  }
  func.func @transform_5(%arg0: i32) -> (i32, i32) {
    %c0_i32 = arith.constant 0 : i32
    %c0_i32_0 = arith.constant 0 : i32
    %c0_i32_1 = arith.constant 0 : i32
    return %c0_i32, %c0_i32_0 : i32, i32
  }
  func.func @transform_6(%arg0: i32) -> (i32, i32) {
    %c0_i32 = arith.constant 0 : i32
    %c0_i32_0 = arith.constant 0 : i32
    %c0_i32_1 = arith.constant 0 : i32
    return %c0_i32, %c0_i32_0 : i32, i32
  }
  func.func @transform_7(%arg0: i32) -> (i32, i32) {
    %c0_i32 = arith.constant 0 : i32
    %c0_i32_0 = arith.constant 0 : i32
    %c0_i32_1 = arith.constant 0 : i32
    return %c0_i32, %c0_i32_0 : i32, i32
  }
  func.func @transform_8(%arg0: i32) -> (i32, i32) {
    %c0_i32 = arith.constant 0 : i32
    %c0_i32_0 = arith.constant 0 : i32
    %c0_i32_1 = arith.constant 0 : i32
    return %c0_i32, %c0_i32_0 : i32, i32
  }
  func.func @transform_9(%arg0: i32) -> (i32, i32) {
    %c0_i32 = arith.constant 0 : i32
    %c0_i32_0 = arith.constant 0 : i32
    return %arg0, %c0_i32 : i32, i32
  }
}

</mosaic_0001>

<bundles_post_ra>
// kernel: tpu_custom_call.1
= control target key start
LH: loop header
LB: loop body
LE: loop exit
PB: predicated region body
PF: predicated region fallthrough
CT: control target
= control target key end

     0   :  { %14 = vsyncpa [#allocation3], 0  ;;  %s952_s0 = inlined_call_operand.hbm [shape: f32[8,16], index: 0, kind: input, shape index: {}]   ;;  %s953_s1 = inlined_call_operand.hbm [shape: f32[16,128], index: 1, kind: input, shape index: {}]   ;;  %s954_s2 = inlined_call_operand.vmem [shape: f32[1,128], index: 2, kind: input, shape index: {}]   ;;  %s955_s3 = inlined_call_operand.hbm [shape: f32[128,128], index: 3, kind: input, shape index: {}]   ;;  %s956_s4 = inlined_call_operand.vmem [shape: f32[1,128], index: 4, kind: input, shape index: {}]   ;;  %s957_s5 = inlined_call_operand.hbm [shape: f32[128,128], index: 5, kind: input, shape index: {}]   ;;  %s958_s6 = inlined_call_operand.vmem [shape: f32[1,128], index: 6, kind: input, shape index: {}]   ;;  %s959_s7 = inlined_call_operand.hbm [shape: f32[128,128], index: 7, kind: input, shape index: {}]   ;;  %s960_s8 = inlined_call_operand.vmem [shape: f32[1,128], index: 8, kind: input, shape index: {}]   ;;  %s961_s9 = inlined_call_operand.hbm [shape: f32[8,128], index: 9, kind: output, shape index: {}]  }
   0x1   :  { %15 = vsyncpa [#allocation6], 0 }
   0x2   :  { %16 = vsyncpa [#allocation9], 0 }
   0x3   :  { %17 = vsyncpa [#allocation4], 0  ;;  %s792_s30 = smov [#allocation5]  }
   0x4   :  { %s33_s10 = sshll.u32 %s792_s30, 4  ;;  %s34_s10 = int_to_ptr.vmem [resolvable:$true] %s33_s10 }
   0x5   :  { %s672_s11 = scalar_lea.vmem %s34_s10, 256  ;;  %p677_p1 = scmp.lt.s32.totalorder %s34_s10, %s34_s10 }
   0x6   :  { %p673_p0 = scmp.ne.s32.totalorder %s34_s10, %s672_s11  ;;  %p678_p2 = scmp.lt.s32.totalorder %s672_s11, %s672_s11 }
   0x8   :  { %p679_p3 = por %p678_p2, %p677_p1 }
   0xa   :  { %p680_p4 = pnand %p679_p3, %p673_p0 }
   0xc   :  { %683 = shalt.err (!%p680_p4)
}
   0xd   :  { %s793_s12 = smov 128   ;;  %s794_s13 = smov 8  }
   0xe   :  { %39 = dma.hbm_to_vmem [thread:$0]  %s953_s1, 256, %s34_s10, [#allocation6], %s793_s12, %s793_s12, %s794_s13  }
   0xf   :  { %s795_s16 = smov [#allocation8]   ;;  %s796_s18 = smov [#allocation2]  }
  0x10   :  { %s61_s17 = sshll.u32 %s795_s16, 4  ;;  %s24_s19 = sshll.u32 %s796_s18, 4  ;;  %s62_s17 = int_to_ptr.vmem [resolvable:$true] %s61_s17  ;;  %s25_s19 = int_to_ptr.vmem [resolvable:$true] %s24_s19 }
  0x11   :  { %s692_s20 = scalar_lea.vmem %s62_s17, 2048  ;;  %p697_p6 = scmp.lt.s32.totalorder %s62_s17, %s62_s17 }
  0x12   :  { %p693_p5 = scmp.ne.s32.totalorder %s62_s17, %s692_s20  ;;  %p698_p7 = scmp.lt.s32.totalorder %s692_s20, %s692_s20 }
  0x14   :  { %p699_p8 = por %p698_p7, %p697_p6 }
  0x16   :  { %p700_p9 = pnand %p699_p8, %p693_p5 }
  0x18   :  { %703 = shalt.err (!%p700_p9)
}
  0x19   :  { %67 = dma.hbm_to_vmem [thread:$0]  %s957_s5, 2048, %s62_s17, [#allocation9], %s793_s12, %s793_s12, %s794_s13  }
  0x1a   :  { %s712_s1 = scalar_lea.vmem %s25_s19, 128  ;;  %p717_p11 = scmp.lt.s32.totalorder %s25_s19, %s25_s19 }
  0x1b   :  { %p713_p10 = scmp.ne.s32.totalorder %s25_s19, %s712_s1  ;;  %p718_p12 = scmp.lt.s32.totalorder %s712_s1, %s712_s1 }
  0x1d   :  { %p719_p13 = por %p718_p12, %p717_p11 }
  0x1f   :  { %p720_p0 = pnand %p719_p13, %p713_p10 }
  0x21   :  { %723 = shalt.err (!%p720_p0)
}
  0x22   :  { %27 = dma.hbm_to_vmem [thread:$0]  %s952_s0, 128, %s25_s19, [#allocation3]  }
  0x23   :  { %s797_s25 = smov [#allocation7]   ;;  %s798_s27 = smov [#allocation10]  }
  0x24   :  { %s47_s26 = sshll.u32 %s797_s25, 4  ;;  %s75_s28 = sshll.u32 %s798_s27, 4  ;;  %s48_s26 = int_to_ptr.vmem [resolvable:$true] %s47_s26  ;;  %s76_s28 = int_to_ptr.vmem [resolvable:$true] %s75_s28 }
  0x25   :  { %s732_s29 = scalar_lea.vmem %s48_s26, 2048  ;;  %p737_p2 = scmp.lt.s32.totalorder %s48_s26, %s48_s26 }
  0x26   :  { %p733_p1 = scmp.ne.s32.totalorder %s48_s26, %s732_s29  ;;  %p738_p3 = scmp.lt.s32.totalorder %s732_s29, %s732_s29 }
  0x28   :  { %p739_p4 = por %p738_p3, %p737_p2 }
  0x2a   :  { %p740_p5 = pnand %p739_p4, %p733_p1 }
  0x2c   :  { %743 = shalt.err (!%p740_p5)
}
  0x2d   :  { %53 = dma.hbm_to_vmem [thread:$0]  %s955_s3, 2048, %s48_s26, [#allocation6], %s793_s12, %s793_s12, %s794_s13  }
  0x2e   :  { %s752_s0 = scalar_lea.vmem %s76_s28, 2048  ;;  %p757_p7 = scmp.lt.s32.totalorder %s76_s28, %s76_s28 }
  0x2f   :  { %p753_p6 = scmp.ne.s32.totalorder %s76_s28, %s752_s0  ;;  %p758_p8 = scmp.lt.s32.totalorder %s752_s0, %s752_s0 }
  0x31   :  { %p759_p9 = por %p758_p8, %p757_p7 }
  0x33   :  { %p760_p10 = pnand %p759_p9, %p753_p6 }
  0x35   :  { %763 = shalt.err (!%p760_p10)
}
  0x36   :  { %81 = dma.hbm_to_vmem [thread:$0]  %s959_s7, 2048, %s76_s28, [#allocation9], %s793_s12, %s793_s12, %s794_s13  }
  0x37   :  { %784 = dma.done.wait [#allocation3], 128  }
  0x38   :  { %785 = vsyncadd [#allocation3], 4294967168 }
  0x39   :  { %786 = dma.done.wait [#allocation6], 2304  }
  0x3a   :  { %787 = vsyncadd [#allocation6], 4294964992 }
  0x3b   :  { %788 = dma.done.wait [#allocation9], 4096  }
  0x3c   :  { %789 = vsyncadd [#allocation9], 4294963200  ;;  %v799_v0 = vmov 0.0   ;;  %vm800_vm0 = vmmov 0   ;;  %v101_v1 = vld [vmem:[#allocation5 + $0x8] sm:$0xff]  ;;  %v100_v2 = vld [vmem:[#allocation5] sm:$0xff] }
  0x3d   :  { %542 = vmatprep.subr.mxu0 %v799_v0  ;;  %546 = vmatprep.mubr.msk.f32.mxu0 %vm800_vm0, %v799_v0  ;;  %v99_v3 = vld [vmem:[#allocation2] sm:$0xff]  ;;  %vm109_vm1 = vcmask 130048   ;;  %v199_v4 = vld [vmem:[#allocation7 + $0x78] sm:$0xff]  ;;  %v198_v5 = vld [vmem:[#allocation7 + $0x70] sm:$0xff]  ;;  %s801_s16 = smov [#allocation11]  }
  0x3e   :  { %549 = vmatprep.subr.mxu1 %v799_v0  ;;  %581 = vmatprep.mubr.msk.f32.mxu1 %vm800_vm0, %v799_v0  ;;  %v197_v6 = vld [vmem:[#allocation7 + $0x68] sm:$0xff]  ;;  %v196_v7 = vld [vmem:[#allocation7 + $0x60] sm:$0xff]  ;;  %v195_v8 = vld [vmem:[#allocation7 + $0x58] sm:$0xff]  ;;  %s472_s17 = sshll.u32 %s801_s16, 4  ;;  %s473_s17 = int_to_ptr.vmem [resolvable:$true] %s472_s17 }
  0x3f   :  { %543 = vmatpush3.msra.mxu0 %v101_v1  ;;  %550 = vmatpush3.msra.mxu1 %v199_v4  ;;  %v194_v9 = vld [vmem:[#allocation7 + $0x50] sm:$0xff]  ;;  %v193_v10 = vld [vmem:[#allocation7 + $0x48] sm:$0xff]  ;;  %v192_v11 = vld [vmem:[#allocation7 + $0x40] sm:$0xff]  ;;  %s764_s18 = scalar_lea.vmem %s473_s17, 128  ;;  %p769_p12 = scmp.lt.s32.totalorder %s473_s17, %s473_s17 }
  0x40   :  { %544 = vmatprep.subr.mxu0 %v799_v0  ;;  %551 = vmatprep.subr.mxu1 %v799_v0  ;;  %v191_v12 = vld [vmem:[#allocation7 + $0x38] sm:$0xff]  ;;  %v190_v13 = vld [vmem:[#allocation7 + $0x30] sm:$0xff]  ;;  %v189_v14 = vld [vmem:[#allocation7 + $0x28] sm:$0xff]  ;;  %p765_p11 = scmp.ne.s32.totalorder %s473_s17, %s764_s18  ;;  %p770_p13 = scmp.lt.s32.totalorder %s764_s18, %s764_s18 }
  0x41   :  { %545 = vmatpush3.msra.mxu0 %v100_v2  ;;  %552 = vmatpush3.msra.mxu1 %v198_v5  ;;  %v188_v15 = vld [vmem:[#allocation7 + $0x20] sm:$0xff]  ;;  %v187_v16 = vld [vmem:[#allocation7 + $0x18] sm:$0xff]  ;;  %v186_v17 = vld [vmem:[#allocation7 + $0x10] sm:$0xff] }
  0x42   :  { %547 = vmatmul.mubr.msk.f32.vlgmr.msra.gmra.mxu0 %vm109_vm1, %v99_v3  ;;  %553 = vmatprep.subr.mxu1 %v799_v0  ;;  %v185_v18 = vld [vmem:[#allocation7 + $0x8] sm:$0xff]  ;;  %v184_v19 = vld [vmem:[#allocation7] sm:$0xff]  ;;  %v293_v20 = vld [vmem:[#allocation8 + $0x78] sm:$0xff]  ;;  %p771_p0 = por %p770_p13, %p769_p12 }
  0x43   :  { %584 = vmatprep.subr.mxu0 %v799_v0  ;;  %554 = vmatpush3.msra.mxu1 %v197_v6  ;;  %v292_v21 = vld [vmem:[#allocation8 + $0x70] sm:$0xff]  ;;  %v291_v22 = vld [vmem:[#allocation8 + $0x68] sm:$0xff]  ;;  %v290_v23 = vld [vmem:[#allocation8 + $0x60] sm:$0xff] }
  0x44   :  { %616 = vmatprep.mubr.msk.f32.mxu0 %vm800_vm0, %v799_v0  ;;  %555 = vmatprep.subr.mxu1 %v799_v0  ;;  %v289_v24 = vld [vmem:[#allocation8 + $0x58] sm:$0xff]  ;;  %v288_v25 = vld [vmem:[#allocation8 + $0x50] sm:$0xff]  ;;  %v287_v26 = vld [vmem:[#allocation8 + $0x48] sm:$0xff]  ;;  %p772_p1 = pnand %p771_p0, %p765_p11 }
  0x45   :  { %556 = vmatpush3.msra.mxu1 %v196_v7  ;;  %585 = vmatpush3.msra.mxu0 %v293_v20  ;;  %v286_v27 = vld [vmem:[#allocation8 + $0x40] sm:$0xff]  ;;  %v285_v28 = vld [vmem:[#allocation8 + $0x38] sm:$0xff]  ;;  %v284_v29 = vld [vmem:[#allocation8 + $0x30] sm:$0xff] }
  0x46   :  { %557 = vmatprep.subr.mxu1 %v799_v0  ;;  %586 = vmatprep.subr.mxu0 %v799_v0  ;;  %v283_v30 = vld [vmem:[#allocation8 + $0x28] sm:$0xff]  ;;  %v282_v31 = vld [vmem:[#allocation8 + $0x20] sm:$0xff]  ;;  %v281_v32 = vld [vmem:[#allocation8 + $0x18] sm:$0xff] }
  0x47   :  { %558 = vmatpush3.msra.mxu1 %v195_v8  ;;  %587 = vmatpush3.msra.mxu0 %v292_v21  ;;  %v483_v33 = vld [vmem:[%s954_s2] ss:$0 sm:$0xff]  ;;  %v280_v38 = vld [vmem:[#allocation8 + $0x10] sm:$0xff]  ;;  %v278_v40 = vld [vmem:[#allocation8] sm:$0xff] }
  0x48   :  { %559 = vmatprep.subr.mxu1 %v799_v0  ;;  %588 = vmatprep.subr.mxu0 %v799_v0  ;;  %v279_v39 = vld [vmem:[#allocation8 + $0x8] sm:$0xff]  ;;  %v387_v41 = vld [vmem:[#allocation10 + $0x78] sm:$0xff]  ;;  %v386_v42 = vld [vmem:[#allocation10 + $0x70] sm:$0xff] }
  0x49   :  { %560 = vmatpush3.msra.mxu1 %v194_v9  ;;  %589 = vmatpush3.msra.mxu0 %v291_v22  ;;  %v385_v43 = vld [vmem:[#allocation10 + $0x68] sm:$0xff]  ;;  %v384_v44 = vld [vmem:[#allocation10 + $0x60] sm:$0xff]  ;;  %v383_v45 = vld [vmem:[#allocation10 + $0x58] sm:$0xff] }
  0x4a   :  { %561 = vmatprep.subr.mxu1 %v799_v0  ;;  %590 = vmatprep.subr.mxu0 %v799_v0  ;;  %v382_v46 = vld [vmem:[#allocation10 + $0x50] sm:$0xff]  ;;  %v381_v47 = vld [vmem:[#allocation10 + $0x48] sm:$0xff]  ;;  %v380_v48 = vld [vmem:[#allocation10 + $0x40] sm:$0xff] }
  0x4b   :  { %562 = vmatpush3.msra.mxu1 %v193_v10  ;;  %591 = vmatpush3.msra.mxu0 %v290_v23  ;;  %v379_v49 = vld [vmem:[#allocation10 + $0x38] sm:$0xff]  ;;  %v378_v50 = vld [vmem:[#allocation10 + $0x30] sm:$0xff]  ;;  %v377_v51 = vld [vmem:[#allocation10 + $0x28] sm:$0xff] }
  0x4c   :  { %563 = vmatprep.subr.mxu1 %v799_v0  ;;  %592 = vmatprep.subr.mxu0 %v799_v0  ;;  %v376_v52 = vld [vmem:[#allocation10 + $0x20] sm:$0xff]  ;;  %v375_v53 = vld [vmem:[#allocation10 + $0x18] sm:$0xff]  ;;  %v485_v54 = vld [vmem:[%s956_s4] ss:$0 sm:$0xff] }
  0x4d   :  { %564 = vmatpush3.msra.mxu1 %v192_v11  ;;  %593 = vmatpush3.msra.mxu0 %v289_v24  ;;  %v374_v59 = vld [vmem:[#allocation10 + $0x10] sm:$0xff]  ;;  %v373_v60 = vld [vmem:[#allocation10 + $0x8] sm:$0xff]  ;;  %v372_v61 = vld [vmem:[#allocation10] sm:$0xff] }
  0x4e   :  { %565 = vmatprep.subr.mxu1 %v799_v0  ;;  %594 = vmatprep.subr.mxu0 %v799_v0  ;;  %v486_v62 = vld [vmem:[%s958_s6] ss:$0 sm:$0xff] }
  0x4f   :  { %566 = vmatpush3.msra.mxu1 %v191_v12  ;;  %595 = vmatpush3.msra.mxu0 %v288_v25  ;;  %v487_v4 = vld [vmem:[%s960_s8] ss:$0 sm:$0xff] }
  0x50   :  { %567 = vmatprep.subr.mxu1 %v799_v0  ;;  %596 = vmatprep.subr.mxu0 %v799_v0 }
  0x51   :  { %568 = vmatpush3.msra.mxu1 %v190_v13  ;;  %597 = vmatpush3.msra.mxu0 %v287_v26 }
  0x52   :  { %569 = vmatprep.subr.mxu1 %v799_v0  ;;  %598 = vmatprep.subr.mxu0 %v799_v0 }
  0x53   :  { %570 = vmatpush3.msra.mxu1 %v189_v14  ;;  %599 = vmatpush3.msra.mxu0 %v286_v27 }
  0x54   :  { %571 = vmatprep.subr.mxu1 %v799_v0  ;;  %600 = vmatprep.subr.mxu0 %v799_v0 }
  0x55   :  { %572 = vmatpush3.msra.mxu1 %v188_v15  ;;  %601 = vmatpush3.msra.mxu0 %v285_v28 }
  0x56   :  { %573 = vmatprep.subr.mxu1 %v799_v0  ;;  %602 = vmatprep.subr.mxu0 %v799_v0 }
  0x57   :  { %574 = vmatpush3.msra.mxu1 %v187_v16  ;;  %603 = vmatpush3.msra.mxu0 %v284_v29 }
  0x58   :  { %575 = vmatprep.subr.mxu1 %v799_v0  ;;  %604 = vmatprep.subr.mxu0 %v799_v0 }
  0x59   :  { %576 = vmatpush3.msra.mxu1 %v186_v17  ;;  %605 = vmatpush3.msra.mxu0 %v283_v30 }
  0x5a   :  { %577 = vmatprep.subr.mxu1 %v799_v0  ;;  %606 = vmatprep.subr.mxu0 %v799_v0 }
  0x5b   :  { %578 = vmatpush3.msra.mxu1 %v185_v18  ;;  %607 = vmatpush3.msra.mxu0 %v282_v31 }
  0x5c   :  { %579 = vmatprep.subr.mxu1 %v799_v0  ;;  %608 = vmatprep.subr.mxu0 %v799_v0 }
  0x5d   :  { %580 = vmatpush3.msra.mxu1 %v184_v19  ;;  %609 = vmatpush3.msra.mxu0 %v281_v32 }
  0x5e   :  { %619 = vmatprep.subr.mxu1 %v799_v0  ;;  %610 = vmatprep.subr.mxu0 %v799_v0 }
  0x5f   :  { %611 = vmatpush3.msra.mxu0 %v280_v38 }
  0x60   :  { %612 = vmatprep.subr.mxu0 %v799_v0 }
  0x61   :  { %613 = vmatpush3.msra.mxu0 %v279_v39 }
  0x62   :  { %614 = vmatprep.subr.mxu0 %v799_v0 }
  0x63   :  { %615 = vmatpush3.msra.mxu0 %v278_v40 }
 0x102   :  { %v179_v34 = vpop.f32.mrf.mxu0 }
 0x103   :  { %v180_v35 = vadd.f32 %v483_v33, %v179_v34 }
 0x104   :  { %v548_v36 = vpop.f32.mrf.mxu0 }
 0x105   :  { %v183_v37 = vmax.f32 %v180_v35, 0.0 }
 0x107   :  { %582 = vmatmul.mubr.f32.vlgmr.msra.gmra.mxu1 %v183_v37 }
 0x108   :  { %651 = vmatprep.mubr.msk.f32.mxu1 %vm800_vm0, %v799_v0  ;;  %620 = vmatpush3.msra.mxu1 %v387_v41 }
 0x109   :  { %621 = vmatprep.subr.mxu1 %v799_v0 }
 0x10a   :  { %622 = vmatpush3.msra.mxu1 %v386_v42 }
 0x10b   :  { %623 = vmatprep.subr.mxu1 %v799_v0 }
 0x10c   :  { %624 = vmatpush3.msra.mxu1 %v385_v43 }
 0x10d   :  { %625 = vmatprep.subr.mxu1 %v799_v0 }
 0x10e   :  { %626 = vmatpush3.msra.mxu1 %v384_v44 }
 0x10f   :  { %627 = vmatprep.subr.mxu1 %v799_v0 }
 0x110   :  { %628 = vmatpush3.msra.mxu1 %v383_v45 }
 0x111   :  { %629 = vmatprep.subr.mxu1 %v799_v0 }
 0x112   :  { %630 = vmatpush3.msra.mxu1 %v382_v46 }
 0x113   :  { %631 = vmatprep.subr.mxu1 %v799_v0 }
 0x114   :  { %632 = vmatpush3.msra.mxu1 %v381_v47 }
 0x115   :  { %633 = vmatprep.subr.mxu1 %v799_v0 }
 0x116   :  { %634 = vmatpush3.msra.mxu1 %v380_v48 }
 0x117   :  { %635 = vmatprep.subr.mxu1 %v799_v0 }
 0x118   :  { %636 = vmatpush3.msra.mxu1 %v379_v49 }
 0x119   :  { %637 = vmatprep.subr.mxu1 %v799_v0 }
 0x11a   :  { %638 = vmatpush3.msra.mxu1 %v378_v50 }
 0x11b   :  { %639 = vmatprep.subr.mxu1 %v799_v0 }
 0x11c   :  { %640 = vmatpush3.msra.mxu1 %v377_v51 }
 0x11d   :  { %641 = vmatprep.subr.mxu1 %v799_v0 }
 0x11e   :  { %642 = vmatpush3.msra.mxu1 %v376_v52 }
 0x11f   :  { %643 = vmatprep.subr.mxu1 %v799_v0 }
 0x120   :  { %644 = vmatpush3.msra.mxu1 %v375_v53 }
 0x121   :  { %645 = vmatprep.subr.mxu1 %v799_v0 }
 0x122   :  { %646 = vmatpush3.msra.mxu1 %v374_v59 }
 0x123   :  { %647 = vmatprep.subr.mxu1 %v799_v0 }
 0x124   :  { %648 = vmatpush3.msra.mxu1 %v373_v60 }
 0x125   :  { %649 = vmatprep.subr.mxu1 %v799_v0 }
 0x126   :  { %650 = vmatpush3.msra.mxu1 %v372_v61 }
 0x1c7   :  { %v273_v55 = vpop.f32.mrf.mxu1 }
 0x1c8   :  { %v274_v56 = vadd.f32 %v485_v54, %v273_v55 }
 0x1c9   :  { %v583_v57 = vpop.f32.mrf.mxu1 }
 0x1ca   :  { %v277_v58 = vmax.f32 %v274_v56, 0.0 }
 0x1cc   :  { %617 = vmatmul.mubr.f32.vlgmr.msra.gmra.mxu0 %v277_v58 }
 0x28c   :  { %v367_v63 = vpop.f32.mrf.mxu0 }
 0x28d   :  { %v368_v1 = vadd.f32 %v486_v62, %v367_v63 }
 0x28e   :  { %v618_v2 = vpop.f32.mrf.mxu0 }
 0x28f   :  { %v371_v3 = vmax.f32 %v368_v1, 0.0 }
 0x291   :  { %652 = vmatmul.mubr.f32.vlgmr.msra.gmra.mxu1 %v371_v3 }
 0x351   :  { %v461_v5 = vpop.f32.mrf.mxu1 }
 0x352   :  { %v462_v6 = vadd.f32 %v487_v4, %v461_v5 }
 0x353   :  { %v653_v0 = vpop.f32.mrf.mxu1 }
 0x354   :  { %465 = vst [vmem:[#allocation11] sm:$0xff] %v462_v6 }
 0x355   :  { %775 = shalt.err (!%p772_p1)
}
 0x356   :  { %475 = dma.vmem_to_hbm [thread:$0]  %s473_s17, 128, %s961_s9, [#allocation4]  }
 0x357   :  { %790 = dma.done.wait [#allocation4], 128  }
 0x358   :  { %791 = vsyncadd [#allocation4], 4294967168 }
 0x359   :  { %479 = vsyncpa [#allocation3], 1 }
 0x35a   :  { %480 = vsyncpa [#allocation6], 1 }
 0x35b   :  { %481 = vsyncpa [#allocation9], 1 }
 0x35c   :  { %482 = vsyncpa [#allocation4], 1 }

// kernel: tpu_custom_call.1
= control target key start
LH: loop header
LB: loop body
LE: loop exit
PB: predicated region body
PF: predicated region fallthrough
CT: control target
= control target key end

     0   :  { %14 = vsyncpa [#allocation3], 0  ;;  %s952_s0 = inlined_call_operand.hbm [shape: f32[8,16], index: 0, kind: input, shape index: {}]   ;;  %s953_s1 = inlined_call_operand.hbm [shape: f32[16,128], index: 1, kind: input, shape index: {}]   ;;  %s954_s2 = inlined_call_operand.vmem [shape: f32[1,128], index: 2, kind: input, shape index: {}]   ;;  %s955_s3 = inlined_call_operand.hbm [shape: f32[128,128], index: 3, kind: input, shape index: {}]   ;;  %s956_s4 = inlined_call_operand.vmem [shape: f32[1,128], index: 4, kind: input, shape index: {}]   ;;  %s957_s5 = inlined_call_operand.hbm [shape: f32[128,128], index: 5, kind: input, shape index: {}]   ;;  %s958_s6 = inlined_call_operand.vmem [shape: f32[1,128], index: 6, kind: input, shape index: {}]   ;;  %s959_s7 = inlined_call_operand.hbm [shape: f32[128,128], index: 7, kind: input, shape index: {}]   ;;  %s960_s8 = inlined_call_operand.vmem [shape: f32[1,128], index: 8, kind: input, shape index: {}]   ;;  %s961_s9 = inlined_call_operand.hbm [shape: f32[8,128], index: 9, kind: output, shape index: {}]  }
   0x1   :  { %15 = vsyncpa [#allocation6], 0 }
   0x2   :  { %16 = vsyncpa [#allocation9], 0 }
   0x3   :  { %17 = vsyncpa [#allocation4], 0  ;;  %s792_s30 = smov [#allocation5]  }
   0x4   :  { %s33_s10 = sshll.u32 %s792_s30, 4  ;;  %s34_s10 = int_to_ptr.vmem [resolvable:$true] %s33_s10 }
   0x5   :  { %s672_s11 = scalar_lea.vmem %s34_s10, 256  ;;  %p677_p1 = scmp.lt.s32.totalorder %s34_s10, %s34_s10 }
   0x6   :  { %p673_p0 = scmp.ne.s32.totalorder %s34_s10, %s672_s11  ;;  %p678_p2 = scmp.lt.s32.totalorder %s672_s11, %s672_s11 }
   0x8   :  { %p679_p3 = por %p678_p2, %p677_p1 }
   0xa   :  { %p680_p4 = pnand %p679_p3, %p673_p0 }
   0xc   :  { %683 = shalt.err (!%p680_p4)
}
   0xd   :  { %s793_s12 = smov 128   ;;  %s794_s13 = smov 8  }
   0xe   :  { %39 = dma.hbm_to_vmem [thread:$0]  %s953_s1, 256, %s34_s10, [#allocation6], %s793_s12, %s793_s12, %s794_s13  }
   0xf   :  { %s795_s16 = smov [#allocation8]   ;;  %s796_s18 = smov [#allocation2]  }
  0x10   :  { %s61_s17 = sshll.u32 %s795_s16, 4  ;;  %s24_s19 = sshll.u32 %s796_s18, 4  ;;  %s62_s17 = int_to_ptr.vmem [resolvable:$true] %s61_s17  ;;  %s25_s19 = int_to_ptr.vmem [resolvable:$true] %s24_s19 }
  0x11   :  { %s692_s20 = scalar_lea.vmem %s62_s17, 2048  ;;  %p697_p6 = scmp.lt.s32.totalorder %s62_s17, %s62_s17 }
  0x12   :  { %p693_p5 = scmp.ne.s32.totalorder %s62_s17, %s692_s20  ;;  %p698_p7 = scmp.lt.s32.totalorder %s692_s20, %s692_s20 }
  0x14   :  { %p699_p8 = por %p698_p7, %p697_p6 }
  0x16   :  { %p700_p9 = pnand %p699_p8, %p693_p5 }
  0x18   :  { %703 = shalt.err (!%p700_p9)
}
  0x19   :  { %67 = dma.hbm_to_vmem [thread:$0]  %s957_s5, 2048, %s62_s17, [#allocation9], %s793_s12, %s793_s12, %s794_s13  }
  0x1a   :  { %s712_s1 = scalar_lea.vmem %s25_s19, 128  ;;  %p717_p11 = scmp.lt.s32.totalorder %s25_s19, %s25_s19 }
  0x1b   :  { %p713_p10 = scmp.ne.s32.totalorder %s25_s19, %s712_s1  ;;  %p718_p12 = scmp.lt.s32.totalorder %s712_s1, %s712_s1 }
  0x1d   :  { %p719_p13 = por %p718_p12, %p717_p11 }
  0x1f   :  { %p720_p0 = pnand %p719_p13, %p713_p10 }
  0x21   :  { %723 = shalt.err (!%p720_p0)
}
  0x22   :  { %27 = dma.hbm_to_vmem [thread:$0]  %s952_s0, 128, %s25_s19, [#allocation3]  }
  0x23   :  { %s797_s25 = smov [#allocation7]   ;;  %s798_s27 = smov [#allocation10]  }
  0x24   :  { %s47_s26 = sshll.u32 %s797_s25, 4  ;;  %s75_s28 = sshll.u32 %s798_s27, 4  ;;  %s48_s26 = int_to_ptr.vmem [resolvable:$true] %s47_s26  ;;  %s76_s28 = int_to_ptr.vmem [resolvable:$true] %s75_s28 }
  0x25   :  { %s732_s29 = scalar_lea.vmem %s48_s26, 2048  ;;  %p737_p2 = scmp.lt.s32.totalorder %s48_s26, %s48_s26 }
  0x26   :  { %p733_p1 = scmp.ne.s32.totalorder %s48_s26, %s732_s29  ;;  %p738_p3 = scmp.lt.s32.totalorder %s732_s29, %s732_s29 }
  0x28   :  { %p739_p4 = por %p738_p3, %p737_p2 }
  0x2a   :  { %p740_p5 = pnand %p739_p4, %p733_p1 }
  0x2c   :  { %743 = shalt.err (!%p740_p5)
}
  0x2d   :  { %53 = dma.hbm_to_vmem [thread:$0]  %s955_s3, 2048, %s48_s26, [#allocation6], %s793_s12, %s793_s12, %s794_s13  }
  0x2e   :  { %s752_s0 = scalar_lea.vmem %s76_s28, 2048  ;;  %p757_p7 = scmp.lt.s32.totalorder %s76_s28, %s76_s28 }
  0x2f   :  { %p753_p6 = scmp.ne.s32.totalorder %s76_s28, %s752_s0  ;;  %p758_p8 = scmp.lt.s32.totalorder %s752_s0, %s752_s0 }
  0x31   :  { %p759_p9 = por %p758_p8, %p757_p7 }
  0x33   :  { %p760_p10 = pnand %p759_p9, %p753_p6 }
  0x35   :  { %763 = shalt.err (!%p760_p10)
}
  0x36   :  { %81 = dma.hbm_to_vmem [thread:$0]  %s959_s7, 2048, %s76_s28, [#allocation9], %s793_s12, %s793_s12, %s794_s13  }
  0x37   :  { %784 = dma.done.wait [#allocation3], 128  }
  0x38   :  { %785 = vsyncadd [#allocation3], 4294967168 }
  0x39   :  { %786 = dma.done.wait [#allocation6], 2304  }
  0x3a   :  { %787 = vsyncadd [#allocation6], 4294964992 }
  0x3b   :  { %788 = dma.done.wait [#allocation9], 4096  }
  0x3c   :  { %789 = vsyncadd [#allocation9], 4294963200  ;;  %v799_v0 = vmov 0.0   ;;  %vm800_vm0 = vmmov 0   ;;  %v101_v1 = vld [vmem:[#allocation5 + $0x8] sm:$0xff]  ;;  %v100_v2 = vld [vmem:[#allocation5] sm:$0xff] }
  0x3d   :  { %542 = vmatprep.subr.mxu0 %v799_v0  ;;  %546 = vmatprep.mubr.msk.f32.mxu0 %vm800_vm0, %v799_v0  ;;  %v99_v3 = vld [vmem:[#allocation2] sm:$0xff]  ;;  %vm109_vm1 = vcmask 130048   ;;  %v199_v4 = vld [vmem:[#allocation7 + $0x78] sm:$0xff]  ;;  %v198_v5 = vld [vmem:[#allocation7 + $0x70] sm:$0xff]  ;;  %s801_s16 = smov [#allocation11]  }
  0x3e   :  { %549 = vmatprep.subr.mxu1 %v799_v0  ;;  %581 = vmatprep.mubr.msk.f32.mxu1 %vm800_vm0, %v799_v0  ;;  %v197_v6 = vld [vmem:[#allocation7 + $0x68] sm:$0xff]  ;;  %v196_v7 = vld [vmem:[#allocation7 + $0x60] sm:$0xff]  ;;  %v195_v8 = vld [vmem:[#allocation7 + $0x58] sm:$0xff]  ;;  %s472_s17 = sshll.u32 %s801_s16, 4  ;;  %s473_s17 = int_to_ptr.vmem [resolvable:$true] %s472_s17 }
  0x3f   :  { %543 = vmatpush3.msra.mxu0 %v101_v1  ;;  %550 = vmatpush3.msra.mxu1 %v199_v4  ;;  %v194_v9 = vld [vmem:[#allocation7 + $0x50] sm:$0xff]  ;;  %v193_v10 = vld [vmem:[#allocation7 + $0x48] sm:$0xff]  ;;  %v192_v11 = vld [vmem:[#allocation7 + $0x40] sm:$0xff]  ;;  %s764_s18 = scalar_lea.vmem %s473_s17, 128  ;;  %p769_p12 = scmp.lt.s32.totalorder %s473_s17, %s473_s17 }
  0x40   :  { %544 = vmatprep.subr.mxu0 %v799_v0  ;;  %551 = vmatprep.subr.mxu1 %v799_v0  ;;  %v191_v12 = vld [vmem:[#allocation7 + $0x38] sm:$0xff]  ;;  %v190_v13 = vld [vmem:[#allocation7 + $0x30] sm:$0xff]  ;;  %v189_v14 = vld [vmem:[#allocation7 + $0x28] sm:$0xff]  ;;  %p765_p11 = scmp.ne.s32.totalorder %s473_s17, %s764_s18  ;;  %p770_p13 = scmp.lt.s32.totalorder %s764_s18, %s764_s18 }
  0x41   :  { %545 = vmatpush3.msra.mxu0 %v100_v2  ;;  %552 = vmatpush3.msra.mxu1 %v198_v5  ;;  %v188_v15 = vld [vmem:[#allocation7 + $0x20] sm:$0xff]  ;;  %v187_v16 = vld [vmem:[#allocation7 + $0x18] sm:$0xff]  ;;  %v186_v17 = vld [vmem:[#allocation7 + $0x10] sm:$0xff] }
  0x42   :  { %547 = vmatmul.mubr.msk.f32.vlgmr.msra.gmra.mxu0 %vm109_vm1, %v99_v3  ;;  %553 = vmatprep.subr.mxu1 %v799_v0  ;;  %v185_v18 = vld [vmem:[#allocation7 + $0x8] sm:$0xff]  ;;  %v184_v19 = vld [vmem:[#allocation7] sm:$0xff]  ;;  %v293_v20 = vld [vmem:[#allocation8 + $0x78] sm:$0xff]  ;;  %p771_p0 = por %p770_p13, %p769_p12 }
  0x43   :  { %584 = vmatprep.subr.mxu0 %v799_v0  ;;  %554 = vmatpush3.msra.mxu1 %v197_v6  ;;  %v292_v21 = vld [vmem:[#allocation8 + $0x70] sm:$0xff]  ;;  %v291_v22 = vld [vmem:[#allocation8 + $0x68] sm:$0xff]  ;;  %v290_v23 = vld [vmem:[#allocation8 + $0x60] sm:$0xff] }
  0x44   :  { %616 = vmatprep.mubr.msk.f32.mxu0 %vm800_vm0, %v799_v0  ;;  %555 = vmatprep.subr.mxu1 %v799_v0  ;;  %v289_v24 = vld [vmem:[#allocation8 + $0x58] sm:$0xff]  ;;  %v288_v25 = vld [vmem:[#allocation8 + $0x50] sm:$0xff]  ;;  %v287_v26 = vld [vmem:[#allocation8 + $0x48] sm:$0xff]  ;;  %p772_p1 = pnand %p771_p0, %p765_p11 }
  0x45   :  { %556 = vmatpush3.msra.mxu1 %v196_v7  ;;  %585 = vmatpush3.msra.mxu0 %v293_v20  ;;  %v286_v27 = vld [vmem:[#allocation8 + $0x40] sm:$0xff]  ;;  %v285_v28 = vld [vmem:[#allocation8 + $0x38] sm:$0xff]  ;;  %v284_v29 = vld [vmem:[#allocation8 + $0x30] sm:$0xff] }
  0x46   :  { %557 = vmatprep.subr.mxu1 %v799_v0  ;;  %586 = vmatprep.subr.mxu0 %v799_v0  ;;  %v283_v30 = vld [vmem:[#allocation8 + $0x28] sm:$0xff]  ;;  %v282_v31 = vld [vmem:[#allocation8 + $0x20] sm:$0xff]  ;;  %v281_v32 = vld [vmem:[#allocation8 + $0x18] sm:$0xff] }
  0x47   :  { %558 = vmatpush3.msra.mxu1 %v195_v8  ;;  %587 = vmatpush3.msra.mxu0 %v292_v21  ;;  %v483_v33 = vld [vmem:[%s954_s2] ss:$0 sm:$0xff]  ;;  %v280_v38 = vld [vmem:[#allocation8 + $0x10] sm:$0xff]  ;;  %v278_v40 = vld [vmem:[#allocation8] sm:$0xff] }
  0x48   :  { %559 = vmatprep.subr.mxu1 %v799_v0  ;;  %588 = vmatprep.subr.mxu0 %v799_v0  ;;  %v279_v39 = vld [vmem:[#allocation8 + $0x8] sm:$0xff]  ;;  %v387_v41 = vld [vmem:[#allocation10 + $0x78] sm:$0xff]  ;;  %v386_v42 = vld [vmem:[#allocation10 + $0x70] sm:$0xff] }
  0x49   :  { %560 = vmatpush3.msra.mxu1 %v194_v9  ;;  %589 = vmatpush3.msra.mxu0 %v291_v22  ;;  %v385_v43 = vld [vmem:[#allocation10 + $0x68] sm:$0xff]  ;;  %v384_v44 = vld [vmem:[#allocation10 + $0x60] sm:$0xff]  ;;  %v383_v45 = vld [vmem:[#allocation10 + $0x58] sm:$0xff] }
  0x4a   :  { %561 = vmatprep.subr.mxu1 %v799_v0  ;;  %590 = vmatprep.subr.mxu0 %v799_v0  ;;  %v382_v46 = vld [vmem:[#allocation10 + $0x50] sm:$0xff]  ;;  %v381_v47 = vld [vmem:[#allocation10 + $0x48] sm:$0xff]  ;;  %v380_v48 = vld [vmem:[#allocation10 + $0x40] sm:$0xff] }
  0x4b   :  { %562 = vmatpush3.msra.mxu1 %v193_v10  ;;  %591 = vmatpush3.msra.mxu0 %v290_v23  ;;  %v379_v49 = vld [vmem:[#allocation10 + $0x38] sm:$0xff]  ;;  %v378_v50 = vld [vmem:[#allocation10 + $0x30] sm:$0xff]  ;;  %v377_v51 = vld [vmem:[#allocation10 + $0x28] sm:$0xff] }
  0x4c   :  { %563 = vmatprep.subr.mxu1 %v799_v0  ;;  %592 = vmatprep.subr.mxu0 %v799_v0  ;;  %v376_v52 = vld [vmem:[#allocation10 + $0x20] sm:$0xff]  ;;  %v375_v53 = vld [vmem:[#allocation10 + $0x18] sm:$0xff]  ;;  %v485_v54 = vld [vmem:[%s956_s4] ss:$0 sm:$0xff] }
  0x4d   :  { %564 = vmatpush3.msra.mxu1 %v192_v11  ;;  %593 = vmatpush3.msra.mxu0 %v289_v24  ;;  %v374_v59 = vld [vmem:[#allocation10 + $0x10] sm:$0xff]  ;;  %v373_v60 = vld [vmem:[#allocation10 + $0x8] sm:$0xff]  ;;  %v372_v61 = vld [vmem:[#allocation10] sm:$0xff] }
  0x4e   :  { %565 = vmatprep.subr.mxu1 %v799_v0  ;;  %594 = vmatprep.subr.mxu0 %v799_v0  ;;  %v486_v62 = vld [vmem:[%s958_s6] ss:$0 sm:$0xff] }
  0x4f   :  { %566 = vmatpush3.msra.mxu1 %v191_v12  ;;  %595 = vmatpush3.msra.mxu0 %v288_v25  ;;  %v487_v4 = vld [vmem:[%s960_s8] ss:$0 sm:$0xff] }
  0x50   :  { %567 = vmatprep.subr.mxu1 %v799_v0  ;;  %596 = vmatprep.subr.mxu0 %v799_v0 }
  0x51   :  { %568 = vmatpush3.msra.mxu1 %v190_v13  ;;  %597 = vmatpush3.msra.mxu0 %v287_v26 }
  0x52   :  { %569 = vmatprep.subr.mxu1 %v799_v0  ;;  %598 = vmatprep.subr.mxu0 %v799_v0 }
  0x53   :  { %570 = vmatpush3.msra.mxu1 %v189_v14  ;;  %599 = vmatpush3.msra.mxu0 %v286_v27 }
  0x54   :  { %571 = vmatprep.subr.mxu1 %v799_v0  ;;  %600 = vmatprep.subr.mxu0 %v799_v0 }
  0x55   :  { %572 = vmatpush3.msra.mxu1 %v188_v15  ;;  %601 = vmatpush3.msra.mxu0 %v285_v28 }
  0x56   :  { %573 = vmatprep.subr.mxu1 %v799_v0  ;;  %602 = vmatprep.subr.mxu0 %v799_v0 }
  0x57   :  { %574 = vmatpush3.msra.mxu1 %v187_v16  ;;  %603 = vmatpush3.msra.mxu0 %v284_v29 }
  0x58   :  { %575 = vmatprep.subr.mxu1 %v799_v0  ;;  %604 = vmatprep.subr.mxu0 %v799_v0 }
  0x59   :  { %576 = vmatpush3.msra.mxu1 %v186_v17  ;;  %605 = vmatpush3.msra.mxu0 %v283_v30 }
  0x5a   :  { %577 = vmatprep.subr.mxu1 %v799_v0  ;;  %606 = vmatprep.subr.mxu0 %v799_v0 }
  0x5b   :  { %578 = vmatpush3.msra.mxu1 %v185_v18  ;;  %607 = vmatpush3.msra.mxu0 %v282_v31 }
  0x5c   :  { %579 = vmatprep.subr.mxu1 %v799_v0  ;;  %608 = vmatprep.subr.mxu0 %v799_v0 }
  0x5d   :  { %580 = vmatpush3.msra.mxu1 %v184_v19  ;;  %609 = vmatpush3.msra.mxu0 %v281_v32 }
  0x5e   :  { %619 = vmatprep.subr.mxu1 %v799_v0  ;;  %610 = vmatprep.subr.mxu0 %v799_v0 }
  0x5f   :  { %611 = vmatpush3.msra.mxu0 %v280_v38 }
  0x60   :  { %612 = vmatprep.subr.mxu0 %v799_v0 }
  0x61   :  { %613 = vmatpush3.msra.mxu0 %v279_v39 }
  0x62   :  { %614 = vmatprep.subr.mxu0 %v799_v0 }
  0x63   :  { %615 = vmatpush3.msra.mxu0 %v278_v40 }
 0x102   :  { %v179_v34 = vpop.f32.mrf.mxu0 }
 0x103   :  { %v180_v35 = vadd.f32 %v483_v33, %v179_v34 }
 0x104   :  { %v548_v36 = vpop.f32.mrf.mxu0 }
 0x105   :  { %v183_v37 = vmax.f32 %v180_v35, 0.0 }
 0x107   :  { %582 = vmatmul.mubr.f32.vlgmr.msra.gmra.mxu1 %v183_v37 }
 0x108   :  { %651 = vmatprep.mubr.msk.f32.mxu1 %vm800_vm0, %v799_v0  ;;  %620 = vmatpush3.msra.mxu1 %v387_v41 }
 0x109   :  { %621 = vmatprep.subr.mxu1 %v799_v0 }
 0x10a   :  { %622 = vmatpush3.msra.mxu1 %v386_v42 }
 0x10b   :  { %623 = vmatprep.subr.mxu1 %v799_v0 }
 0x10c   :  { %624 = vmatpush3.msra.mxu1 %v385_v43 }
 0x10d   :  { %625 = vmatprep.subr.mxu1 %v799_v0 }
 0x10e   :  { %626 = vmatpush3.msra.mxu1 %v384_v44 }
 0x10f   :  { %627 = vmatprep.subr.mxu1 %v799_v0 }
 0x110   :  { %628 = vmatpush3.msra.mxu1 %v383_v45 }
 0x111   :  { %629 = vmatprep.subr.mxu1 %v799_v0 }
 0x112   :  { %630 = vmatpush3.msra.mxu1 %v382_v46 }
 0x113   :  { %631 = vmatprep.subr.mxu1 %v799_v0 }
 0x114   :  { %632 = vmatpush3.msra.mxu1 %v381_v47 }
 0x115   :  { %633 = vmatprep.subr.mxu1 %v799_v0 }
 0x116   :  { %634 = vmatpush3.msra.mxu1 %v380_v48 }
 0x117   :  { %635 = vmatprep.subr.mxu1 %v799_v0 }
 0x118   :  { %636 = vmatpush3.msra.mxu1 %v379_v49 }
 0x119   :  { %637 = vmatprep.subr.mxu1 %v799_v0 }
 0x11a   :  { %638 = vmatpush3.msra.mxu1 %v378_v50 }
 0x11b   :  { %639 = vmatprep.subr.mxu1 %v799_v0 }
 0x11c   :  { %640 = vmatpush3.msra.mxu1 %v377_v51 }
 0x11d   :  { %641 = vmatprep.subr.mxu1 %v799_v0 }
 0x11e   :  { %642 = vmatpush3.msra.mxu1 %v376_v52 }
 0x11f   :  { %643 = vmatprep.subr.mxu1 %v799_v0 }
 0x120   :  { %644 = vmatpush3.msra.mxu1 %v375_v53 }
 0x121   :  { %645 = vmatprep.subr.mxu1 %v799_v0 }
 0x122   :  { %646 = vmatpush3.msra.mxu1 %v374_v59 }
 0x123   :  { %647 = vmatprep.subr.mxu1 %v799_v0 }
 0x124   :  { %648 = vmatpush3.msra.mxu1 %v373_v60 }
 0x125   :  { %649 = vmatprep.subr.mxu1 %v799_v0 }
 0x126   :  { %650 = vmatpush3.msra.mxu1 %v372_v61 }
 0x1c7   :  { %v273_v55 = vpop.f32.mrf.mxu1 }
 0x1c8   :  { %v274_v56 = vadd.f32 %v485_v54, %v273_v55 }
 0x1c9   :  { %v583_v57 = vpop.f32.mrf.mxu1 }
 0x1ca   :  { %v277_v58 = vmax.f32 %v274_v56, 0.0 }
 0x1cc   :  { %617 = vmatmul.mubr.f32.vlgmr.msra.gmra.mxu0 %v277_v58 }
 0x28c   :  { %v367_v63 = vpop.f32.mrf.mxu0 }
 0x28d   :  { %v368_v1 = vadd.f32 %v486_v62, %v367_v63 }
 0x28e   :  { %v618_v2 = vpop.f32.mrf.mxu0 }
 0x28f   :  { %v371_v3 = vmax.f32 %v368_v1, 0.0 }
 0x291   :  { %652 = vmatmul.mubr.f32.vlgmr.msra.gmra.mxu1 %v371_v3 }
 0x351   :  { %v461_v5 = vpop.f32.mrf.mxu1 }
 0x352   :  { %v462_v6 = vadd.f32 %v487_v4, %v461_v5 }
 0x353   :  { %v653_v0 = vpop.f32.mrf.mxu1 }
 0x354   :  { %465 = vst [vmem:[#allocation11] sm:$0xff] %v462_v6 }
 0x355   :  { %775 = shalt.err (!%p772_p1)
}
 0x356   :  { %475 = dma.vmem_to_hbm [thread:$0]  %s473_s17, 128, %s961_s9, [#allocation4]  }
 0x357   :  { %790 = dma.done.wait [#allocation4], 128  }
 0x358   :  { %791 = vsyncadd [#allocation4], 4294967168 }
 0x359   :  { %479 = vsyncpa [#allocation3], 1 }
 0x35a   :  { %480 = vsyncpa [#allocation6], 1 }
 0x35b   :  { %481 = vsyncpa [#allocation9], 1 }
 0x35c   :  { %482 = vsyncpa [#allocation4], 1 }

</bundles_post_ra>
